<compile_context>
chip_gen: v6e
topology: v6e:2x2x1
jax: 0.10.0
libtpu: 0.0.40
codegen_flags: <defaults>
</compile_context>

<pallas_src>
import jax
import jax.numpy as jnp
from jax.experimental import pallas as pl
from jax.experimental.pallas import tpu as pltpu


def value_head_kernel(x_ref, w1_ref, b1_ref, w2_ref, b2_ref, w3_ref, b3_ref, o_ref):
    # ---- Layer 1: bf16 MXU matmul, f32 accumulation; bias + ReLU on the VPU.
    x = x_ref[...].astype(jnp.bfloat16)          # no-op if upstream is already bf16
    z1 = jnp.dot(x, w1_ref[...], preferred_element_type=jnp.float32) + b1_ref[...]
    z1 = jnp.maximum(z1, 0.0)

    # ---- Layer 2: same, feeding the MXU bf16 activations.
    z2 = jnp.dot(z1.astype(jnp.bfloat16), w2_ref[...],
                 preferred_element_type=jnp.float32) + b2_ref[...]
    z2 = jnp.maximum(z2, 0.0)

    # ---- Layer 3 (H -> 1), kept off the MXU (an N=1 matmul wastes the array).
    # VPU multiply, then fold the H lanes down to a single 128-lane column with
    # static, 128-aligned slices (pure VPU adds) ...
    part = z2 * w3_ref[...]                                     # (bm, H) f32
    h = part.shape[-1]
    folded = part[:, 0:128]
    for k in range(1, h // 128):
        folded = folded + part[:, k * 128:(k + 1) * 128]        # (bm, 128)
    # ... then one small XLU transpose + sublane reduce so the per-row scalars
    # land lane-major and the output store is a dense (1, bm) row.
    red = jnp.sum(jnp.transpose(folded, (1, 0)), axis=0, keepdims=True)  # (1, bm)
    o_ref[...] = (red + b3_ref[0]).astype(o_ref.dtype)


def _pick_bm(B, min_grid_steps=1):
    """Batch tile.  On single-TensorCore chips (v5e/v6e) the grid is a sequential
    loop, so one big tile (fills the 256-wide MXU, ~85% of the streamed-x HBM
    roofline) beats several small ones.  Pass min_grid_steps=2 on v7x so the
    'parallel' batch axis has work for both TensorCores."""
    for cand in (1024, 512, 256, 128):
        if B % cand == 0 and B // cand >= min_grid_steps:
            return cand
    return B          # single full-batch tile (block == full array, no alignment demands)


def value_head(x, params, *, bm=None, min_grid_steps=1):
    """x: (B, H) float32 or bfloat16.  Returns (B,) -- matches out.squeeze(-1)."""
    B, H = x.shape
    assert H % 128 == 0, "hidden_dim must be a multiple of 128 (lane tiling)"
    assert B % 8 == 0, "batch must be a multiple of 8 (sublane tiling)"
    if bm is None:
        bm = _pick_bm(B, min_grid_steps)
    assert B % bm == 0
    # bf16 sublane packing is (16, 128); _pick_bm only returns 128-multiples or B.
    assert bm == B or bm % 16 == 0, "batch tile must be a multiple of 16 (or the full batch)"
    grid = B // bm

    w1, b1, w2, b2, w3, b3 = params
    # MXU-facing weights in bf16 (f32 accumulation happens in-kernel).
    w1 = w1.astype(jnp.bfloat16)
    w2 = w2.astype(jnp.bfloat16)
    # Biases / final weight as lane-major f32 rows; b3 as an SMEM scalar.
    b1 = b1.reshape(1, H).astype(jnp.float32)
    b2 = b2.reshape(1, H).astype(jnp.float32)
    w3 = w3.reshape(1, H).astype(jnp.float32)
    b3 = b3.reshape(1).astype(jnp.float32)

    # Weight-resident layout guard: v7x only has 64 MiB of VMEM per TensorCore.
    resident_bytes = 2 * H * H * 2 + 3 * 8 * H * 4
    # TODO(synk): if hidden_dim ever grows to ~3.5-4k, switch to K-tiled weights
    # (grid axis over K with an f32 accumulator) instead of fully-resident W1/W2.
    assert resident_bytes < (48 << 20), "hidden_dim too large for weight-resident layout"

    # Honest VMEM footprint: resident weights (Pallas keeps them in place since the
    # index_map is constant), double-buffered x tile, tiny double-buffered output
    # row, f32/bf16 intermediates, plus fixed slack for compiler scratch.
    vmem_bytes = (
        resident_bytes
        + 2 * bm * H * x.dtype.itemsize     # x tile, double-buffered
        + 2 * 8 * bm * 4                    # (1, bm) output row, sublane-padded, 2 bufs
        + 6 * bm * H * 4                    # z1 / z2 / part + bf16 copies
    )
    vmem_limit = int(min(vmem_bytes + (4 << 20), 64 << 20))

    out = pl.pallas_call(
        value_head_kernel,
        out_shape=jax.ShapeDtypeStruct((grid, bm), x.dtype),
        grid_spec=pltpu.PrefetchScalarGridSpec(
            num_scalar_prefetch=0,
            grid=(grid,),
            in_specs=[
                pl.BlockSpec((bm, H), lambda i: (i, 0)),            # x tile (streamed)
                pl.BlockSpec((H, H), lambda i: (0, 0)),             # W1 (bf16, resident)
                pl.BlockSpec((1, H), lambda i: (0, 0)),             # b1
                pl.BlockSpec((H, H), lambda i: (0, 0)),             # W2 (bf16, resident)
                pl.BlockSpec((1, H), lambda i: (0, 0)),             # b2
                pl.BlockSpec((1, H), lambda i: (0, 0)),             # w3 row
                pl.BlockSpec(memory_space=pltpu.MemorySpace.SMEM),  # b3 scalar
            ],
            out_specs=pl.BlockSpec((1, bm), lambda i: (i, 0)),      # lane-dense rows
        ),
        compiler_params=pltpu.CompilerParams(
            # On v7x, call with min_grid_steps=2 (even grid length) so both
            # TensorCores take half of this "parallel" batch axis.
            dimension_semantics=("parallel",),
            vmem_limit_bytes=vmem_limit,
        ),
    )(x, w1, b1, w2, b2, w3, b3)

    return out.reshape(B)   # squeeze(-1) equivalent, done in glue


def init_params(key, hidden_dim):
    """Deterministic synthetic init; weight layout (in, out)."""
    k1, k2, k3, k4, k5, k6 = jax.random.split(key, 6)
    s = 1.0 / jnp.sqrt(hidden_dim)
    w1 = jax.random.uniform(k1, (hidden_dim, hidden_dim), jnp.float32, -s, s)
    b1 = jax.random.uniform(k2, (hidden_dim,), jnp.float32, -s, s)
    w2 = jax.random.uniform(k3, (hidden_dim, hidden_dim), jnp.float32, -s, s)
    b2 = jax.random.uniform(k4, (hidden_dim,), jnp.float32, -s, s)
    w3 = jax.random.uniform(k5, (hidden_dim, 1), jnp.float32, -s, s)
    b3 = jax.random.uniform(k6, (1,), jnp.float32, -s, s)
    return (w1, b1, w2, b2, w3, b3)


def value_head_ref(x, params):
    w1, b1, w2, b2, w3, b3 = params
    z1 = jnp.maximum(x @ w1 + b1, 0.0)
    z2 = jnp.maximum(z1 @ w2 + b2, 0.0)
    return (z2 @ w3 + b3)[..., 0]


if __name__ == "__main__":
    hidden_dim = 256   # small, lane-aligned stand-in for the module's default 512
    batch = 128        # -> bm = 128, single grid step, fully canonical tile shapes

    key = jax.random.PRNGKey(0)
    kx, kp = jax.random.split(key)
    x = jax.random.normal(kx, (batch, hidden_dim), jnp.float32)
    params = init_params(kp, hidden_dim)

    out = jax.block_until_ready(value_head(x, params))
    ref = value_head_ref(x, params)

    assert out.shape == (batch,), out.shape
    # bf16 matmul operands (f32 accumulation) -> loosened tolerance vs f32 ref.
    err = float(jnp.max(jnp.abs(out - ref)))
    assert jnp.allclose(out, ref, atol=2e-2, rtol=2e-2), err

    print("KERNEL_OK")
</pallas_src>

<mosaic_0001>
module attributes {stable_mosaic.version = 11 : i64} {
  func.func @value_head_kernel(%arg0: i32, %arg1: memref<128x256xf32, #tpu.memory_space<vmem>>, %arg2: memref<256x256xbf16, #tpu.memory_space<vmem>>, %arg3: memref<1x256xf32, #tpu.memory_space<vmem>>, %arg4: memref<256x256xbf16, #tpu.memory_space<vmem>>, %arg5: memref<1x256xf32, #tpu.memory_space<vmem>>, %arg6: memref<1x256xf32, #tpu.memory_space<vmem>>, %arg7: memref<1xf32, #tpu.memory_space<smem>>, %arg8: memref<1x128xf32, #tpu.memory_space<vmem>>) attributes {dimension_semantics = [#tpu.dimension_semantics<parallel>], iteration_bounds = array<i64: 1>, scalar_prefetch = 0 : i64, scratch_operands = 0 : i64, tpu.core_type = #tpu.core_type<tc>, window_params = [{transform_indices = @transform_0, window_bounds = array<i64: 128, 256>}, {pipeline_mode = #tpu.pipeline_mode<synchronous>, transform_indices = @transform_1, window_bounds = array<i64: 256, 256>}, {pipeline_mode = #tpu.pipeline_mode<synchronous>, transform_indices = @transform_2, window_bounds = array<i64: 1, 256>}, {pipeline_mode = #tpu.pipeline_mode<synchronous>, transform_indices = @transform_3, window_bounds = array<i64: 256, 256>}, {pipeline_mode = #tpu.pipeline_mode<synchronous>, transform_indices = @transform_4, window_bounds = array<i64: 1, 256>}, {pipeline_mode = #tpu.pipeline_mode<synchronous>, transform_indices = @transform_5, window_bounds = array<i64: 1, 256>}, {transform_indices = @transform_6, window_bounds = array<i64: 1>}, {transform_indices = @transform_7, window_bounds = array<i64: 1, 128>}]} {
    %c0 = arith.constant 0 : index
    %c0_0 = arith.constant 0 : index
    %0 = vector.load %arg1[%c0, %c0_0] : memref<128x256xf32, #tpu.memory_space<vmem>>, vector<128x256xf32>
    %1 = arith.truncf %0 : vector<128x256xf32> to vector<128x256xbf16>
    %c0_1 = arith.constant 0 : index
    %c0_2 = arith.constant 0 : index
    %2 = vector.load %arg2[%c0_1, %c0_2] : memref<256x256xbf16, #tpu.memory_space<vmem>>, vector<256x256xbf16>
    %cst = arith.constant dense<0.000000e+00> : vector<128x256xf32>
    %3 = tpu.matmul %1, %2, %cst {dimension_numbers = #tpu.dot_dimension_numbers<[1], [0], [0], [1], [0, 0, 1, 1], [], []>} : vector<128x256xbf16>, vector<256x256xbf16>, vector<128x256xf32> -> vector<128x256xf32>
    %c0_3 = arith.constant 0 : index
    %c0_4 = arith.constant 0 : index
    %4 = vector.load %arg3[%c0_3, %c0_4] : memref<1x256xf32, #tpu.memory_space<vmem>>, vector<1x256xf32>
    %5 = vector.broadcast %4 : vector<1x256xf32> to vector<128x256xf32>
    %6 = arith.addf %3, %5 : vector<128x256xf32>
    %cst_5 = arith.constant 0.000000e+00 : f32
    %7 = vector.broadcast %cst_5 : f32 to vector<128x256xf32>
    %8 = arith.maximumf %6, %7 : vector<128x256xf32>
    %9 = arith.truncf %8 : vector<128x256xf32> to vector<128x256xbf16>
    %c0_6 = arith.constant 0 : index
    %c0_7 = arith.constant 0 : index
    %10 = vector.load %arg4[%c0_6, %c0_7] : memref<256x256xbf16, #tpu.memory_space<vmem>>, vector<256x256xbf16>
    %cst_8 = arith.constant dense<0.000000e+00> : vector<128x256xf32>
    %11 = tpu.matmul %9, %10, %cst_8 {dimension_numbers = #tpu.dot_dimension_numbers<[1], [0], [0], [1], [0, 0, 1, 1], [], []>} : vector<128x256xbf16>, vector<256x256xbf16>, vector<128x256xf32> -> vector<128x256xf32>
    %c0_9 = arith.constant 0 : index
    %c0_10 = arith.constant 0 : index
    %12 = vector.load %arg5[%c0_9, %c0_10] : memref<1x256xf32, #tpu.memory_space<vmem>>, vector<1x256xf32>
    %13 = vector.broadcast %12 : vector<1x256xf32> to vector<128x256xf32>
    %14 = arith.addf %11, %13 : vector<128x256xf32>
    %cst_11 = arith.constant 0.000000e+00 : f32
    %15 = vector.broadcast %cst_11 : f32 to vector<128x256xf32>
    %16 = arith.maximumf %14, %15 : vector<128x256xf32>
    %c0_12 = arith.constant 0 : index
    %c0_13 = arith.constant 0 : index
    %17 = vector.load %arg6[%c0_12, %c0_13] : memref<1x256xf32, #tpu.memory_space<vmem>>, vector<1x256xf32>
    %18 = vector.broadcast %17 : vector<1x256xf32> to vector<128x256xf32>
    %19 = arith.mulf %16, %18 : vector<128x256xf32>
    %20 = vector.extract_strided_slice %19 {offsets = [0, 0], sizes = [128, 128], strides = [1, 1]} : vector<128x256xf32> to vector<128x128xf32>
    %21 = vector.extract_strided_slice %19 {offsets = [0, 128], sizes = [128, 128], strides = [1, 1]} : vector<128x256xf32> to vector<128x128xf32>
    %22 = arith.addf %20, %21 : vector<128x128xf32>
    %23 = tpu.transpose %22, [1, 0] : vector<128x128xf32> -> vector<128x128xf32>
    %cst_14 = arith.constant dense<0.000000e+00> : vector<128xf32>
    %24 = vector.multi_reduction <add>, %23, %cst_14 [0] : vector<128x128xf32> to vector<128xf32>
    %25 = vector.shape_cast %24 : vector<128xf32> to vector<1x128xf32>
    %c0_15 = arith.constant 0 : index
    %26 = memref.load %arg7[%c0_15] : memref<1xf32, #tpu.memory_space<smem>>
    %27 = vector.broadcast %26 : f32 to vector<1x128xf32>
    %28 = arith.addf %25, %27 : vector<1x128xf32>
    %c0_16 = arith.constant 0 : index
    %c0_17 = arith.constant 0 : index
    %29 = vector.load %arg8[%c0_16, %c0_17] : memref<1x128xf32, #tpu.memory_space<vmem>>, vector<1x128xf32>
    tpu.vector_store %arg8[%c0_16, %c0_17], %28 {strides = array<i32>} : memref<1x128xf32, #tpu.memory_space<vmem>>, vector<1x128xf32>,
    return
  }
  func.func @transform_0(%arg0: i32) -> (i32, i32) {
    %c0_i32 = arith.constant 0 : i32
    %c0_i32_0 = arith.constant 0 : i32
    return %arg0, %c0_i32 : i32, i32
  }
  func.func @transform_1(%arg0: i32) -> (i32, i32) {
    %c0_i32 = arith.constant 0 : i32
    %c0_i32_0 = arith.constant 0 : i32
    %c0_i32_1 = arith.constant 0 : i32
    return %c0_i32, %c0_i32_0 : i32, i32
  }
  func.func @transform_2(%arg0: i32) -> (i32, i32) {
    %c0_i32 = arith.constant 0 : i32
    %c0_i32_0 = arith.constant 0 : i32
    %c0_i32_1 = arith.constant 0 : i32
    return %c0_i32, %c0_i32_0 : i32, i32
  }
  func.func @transform_3(%arg0: i32) -> (i32, i32) {
    %c0_i32 = arith.constant 0 : i32
    %c0_i32_0 = arith.constant 0 : i32
    %c0_i32_1 = arith.constant 0 : i32
    return %c0_i32, %c0_i32_0 : i32, i32
  }
  func.func @transform_4(%arg0: i32) -> (i32, i32) {
    %c0_i32 = arith.constant 0 : i32
    %c0_i32_0 = arith.constant 0 : i32
    %c0_i32_1 = arith.constant 0 : i32
    return %c0_i32, %c0_i32_0 : i32, i32
  }
  func.func @transform_5(%arg0: i32) -> (i32, i32) {
    %c0_i32 = arith.constant 0 : i32
    %c0_i32_0 = arith.constant 0 : i32
    %c0_i32_1 = arith.constant 0 : i32
    return %c0_i32, %c0_i32_0 : i32, i32
  }
  func.func @transform_6(%arg0: i32) -> i32 {
    %c0_i32 = arith.constant 0 : i32
    %c0_i32_0 = arith.constant 0 : i32
    return %c0_i32 : i32
  }
  func.func @transform_7(%arg0: i32) -> (i32, i32) {
    %c0_i32 = arith.constant 0 : i32
    %c0_i32_0 = arith.constant 0 : i32
    return %arg0, %c0_i32 : i32, i32
  }
}

</mosaic_0001>

<bundles_post_ra>
// kernel: tpu_custom_call.1
= control target key start
LH: loop header
LB: loop body
LE: loop exit
PB: predicated region body
PF: predicated region fallthrough
CT: control target
= control target key end

     0   :  { %13 = vsyncpa [#allocation4], 0  ;;  %s1408_s0 = inlined_call_operand.hbm [shape: f32[128,256], index: 0, kind: input, shape index: {}]   ;;  %s1409_s1 = inlined_call_operand.hbm [shape: bf16[256,256], index: 1, kind: input, shape index: {}]   ;;  %s1410_s2 = inlined_call_operand.vmem [shape: f32[1,256], index: 2, kind: input, shape index: {}]   ;;  %s1411_s3 = inlined_call_operand.hbm [shape: bf16[256,256], index: 3, kind: input, shape index: {}]   ;;  %s1412_s4 = inlined_call_operand.vmem [shape: f32[1,256], index: 4, kind: input, shape index: {}]   ;;  %s1413_s5 = inlined_call_operand.vmem [shape: f32[1,256], index: 5, kind: input, shape index: {}]   ;;  %s1414_s6 = inlined_call_operand.<no memory space> [shape: f32[1], index: 6, kind: input, shape index: {}]   ;;  %s1415_s7 = inlined_call_operand.hbm [shape: f32[1,128], index: 7, kind: output, shape index: {}]  }
   0x1   :  { %14 = vsyncpa [#allocation7], 0 }
   0x2   :  { %15 = vsyncpa [#allocation5], 0  ;;  %s1218_s24 = smov [#allocation6]  }
   0x3   :  { %s33_s25 = sshll.u32 %s1218_s24, 4  ;;  %s34_s25 = int_to_ptr.vmem [resolvable:$true] %s33_s25 }
   0x4   :  { %s1140_s26 = scalar_lea.vmem %s34_s25, 4096  ;;  %p1145_p1 = scmp.lt.s32.totalorder %s34_s25, %s34_s25 }
   0x5   :  { %p1141_p0 = scmp.ne.s32.totalorder %s34_s25, %s1140_s26  ;;  %p1146_p2 = scmp.lt.s32.totalorder %s1140_s26, %s1140_s26 }
   0x7   :  { %p1147_p3 = por %p1146_p2, %p1145_p1 }
   0x9   :  { %p1148_p4 = pnand %p1147_p3, %p1141_p0 }
   0xb   :  { %1151 = shalt.err (!%p1148_p4)
}
   0xc   :  { %s1219_s27 = smov 128   ;;  %s1220_s28 = smov 8  }
   0xd   :  { %39 = dma.hbm_to_vmem [thread:$0]  %s1409_s1, 4096, %s34_s25, [#allocation7], %s1219_s27, %s1219_s27, %s1220_s28  }
   0xe   :  { %s1221_s8 = smov [#allocation3]  }
   0xf   :  { %s21_s9 = sshll.u32 %s1221_s8, 4  ;;  %s22_s9 = int_to_ptr.vmem [resolvable:$true] %s21_s9 }
  0x10   :  { %s1160_s10 = scalar_lea.vmem %s22_s9, 4096  ;;  %p1165_p6 = scmp.lt.s32.totalorder %s22_s9, %s22_s9 }
  0x11   :  { %p1161_p5 = scmp.ne.s32.totalorder %s22_s9, %s1160_s10  ;;  %p1166_p7 = scmp.lt.s32.totalorder %s1160_s10, %s1160_s10 }
  0x13   :  { %p1167_p8 = por %p1166_p7, %p1165_p6 }
  0x15   :  { %p1168_p9 = pnand %p1167_p8, %p1161_p5 }
  0x17   :  { %1171 = shalt.err (!%p1168_p9)
}
  0x18   :  { %s1222_s11 = smov 256   ;;  %s1223_s12 = smov 16  }
  0x19   :  { %27 = dma.hbm_to_vmem [thread:$0]  %s1408_s0, 4096, %s22_s9, [#allocation4], %s1222_s11, %s1222_s11, %s1223_s12  }
  0x1a   :  { %s1224_s15 = smov [#allocation8]  }
  0x1b   :  { %s47_s16 = sshll.u32 %s1224_s15, 4  ;;  %s48_s16 = int_to_ptr.vmem [resolvable:$true] %s47_s16 }
  0x1c   :  { %s1180_s1 = scalar_lea.vmem %s48_s16, 4096  ;;  %p1185_p11 = scmp.lt.s32.totalorder %s48_s16, %s48_s16 }
  0x1d   :  { %p1181_p10 = scmp.ne.s32.totalorder %s48_s16, %s1180_s1  ;;  %p1186_p12 = scmp.lt.s32.totalorder %s1180_s1, %s1180_s1 }
  0x1f   :  { %p1187_p13 = por %p1186_p12, %p1185_p11 }
  0x21   :  { %p1188_p0 = pnand %p1187_p13, %p1181_p10 }
  0x23   :  { %1191 = shalt.err (!%p1188_p0)
}
  0x24   :  { %53 = dma.hbm_to_vmem [thread:$0]  %s1411_s3, 4096, %s48_s16, [#allocation7], %s1219_s27, %s1219_s27, %s1220_s28  }
  0x25   :  { %1212 = dma.done.wait [#allocation4], 4096  }
  0x26   :  { %1213 = vsyncadd [#allocation4], 4294963200 }
  0x27   :  { %1214 = dma.done.wait [#allocation7], 8192  }
  0x28   :  { %1215 = vsyncadd [#allocation7], 4294959104  ;;  %v1036_v0 = vld [vmem:[#allocation6 + $0x74] ss:$8 sps:$4 sm:$0xff]   ;;  %v1038_v1 = vld [vmem:[#allocation6 + $0x70] ss:$8 sps:$4 sm:$0xff]  }
  0x29   :  { %321 = vmatprep.subr.bf16.mxu0 %v1036_v0  ;;  %v1039_v2 = vld [vmem:[#allocation6 + $0x64] ss:$8 sps:$4 sm:$0xff]   ;;  %v1041_v3 = vld [vmem:[#allocation6 + $0x60] ss:$8 sps:$4 sm:$0xff]   ;;  %v1042_v4 = vld [vmem:[#allocation6 + $0x54] ss:$8 sps:$4 sm:$0xff]  }
  0x2a   :  { %322 = vmatpush1.bf16.msra.mxu0 %v1038_v1  ;;  %v1044_v5 = vld [vmem:[#allocation6 + $0x50] ss:$8 sps:$4 sm:$0xff]   ;;  %v1045_v6 = vld [vmem:[#allocation6 + $0x44] ss:$8 sps:$4 sm:$0xff]   ;;  %v1047_v7 = vld [vmem:[#allocation6 + $0x40] ss:$8 sps:$4 sm:$0xff]  }
  0x2b   :  { %323 = vmatprep.subr.bf16.mxu0 %v1039_v2  ;;  %v1048_v8 = vld [vmem:[#allocation6 + $0x34] ss:$8 sps:$4 sm:$0xff]   ;;  %v1050_v9 = vld [vmem:[#allocation6 + $0x30] ss:$8 sps:$4 sm:$0xff]   ;;  %v1051_v10 = vld [vmem:[#allocation6 + $0x24] ss:$8 sps:$4 sm:$0xff]  }
  0x2c   :  { %v1053_v11 = vld [vmem:[#allocation6 + $0x20] ss:$8 sps:$4 sm:$0xff]   ;;  %v1054_v12 = vld [vmem:[#allocation6 + $0x14] ss:$8 sps:$4 sm:$0xff]   ;;  %v1056_v16 = vld [vmem:[#allocation6 + $0x10] ss:$8 sps:$4 sm:$0xff]  }
  0x2d   :  { %v70_v13 = vld [vmem:[#allocation3 + $0x8] sm:$0xff]  ;;  %v72_v14 = vld [vmem:[#allocation3 + $0x18] sm:$0xff]  ;;  %v69_v50 = vld [vmem:[#allocation3] sm:$0xff]  ;;  %s1225_s22 = smov [#allocation9]  }
  0x2e   :  { %324 = vmatpush1.bf16.msra.mxu0 %v1041_v3  ;;  %v102_v15 = vpack.c.bf16 %v72_v14, %v70_v13  ;;  %v1057_v17 = vld [vmem:[#allocation6 + $0x4] ss:$8 sps:$4 sm:$0xff]   ;;  %v1059_v18 = vld [vmem:[#allocation6] ss:$8 sps:$4 sm:$0xff]   ;;  %v1060_v19 = vld [vmem:[#allocation6 + $0xf4] ss:$8 sps:$4 sm:$0xff]  }
  0x2f   :  { %325 = vmatprep.subr.bf16.mxu0 %v1042_v4  ;;  %v1062_v20 = vld [vmem:[#allocation6 + $0xf0] ss:$8 sps:$4 sm:$0xff]   ;;  %v1063_v21 = vld [vmem:[#allocation6 + $0xe4] ss:$8 sps:$4 sm:$0xff]   ;;  %v1084_v22 = vld [vmem:[#allocation8 + $0x74] ss:$8 sps:$4 sm:$0xff]  }
  0x30   :  { %353 = vmatprep.mubr.bf16.mxu0 %v102_v15  ;;  %v1086_v23 = vld [vmem:[#allocation8 + $0x70] ss:$8 sps:$4 sm:$0xff]   ;;  %v1065_v24 = vld [vmem:[#allocation6 + $0xe0] ss:$8 sps:$4 sm:$0xff]   ;;  %686 = vmatprep.subr.bf16.mxu1 %v1084_v22  ;;  %v1087_v25 = vld [vmem:[#allocation8 + $0x64] ss:$8 sps:$4 sm:$0xff]  }
  0x31   :  { %v1066_v26 = vld [vmem:[#allocation6 + $0xd4] ss:$8 sps:$4 sm:$0xff]   ;;  %687 = vmatpush1.bf16.msra.mxu1 %v1086_v23  ;;  %v1089_v27 = vld [vmem:[#allocation8 + $0x60] ss:$8 sps:$4 sm:$0xff]   ;;  %v1068_v29 = vld [vmem:[#allocation6 + $0xd0] ss:$8 sps:$4 sm:$0xff]  }
  0x32   :  { %326 = vmatpush1.bf16.msra.mxu0 %v1044_v5  ;;  %688 = vmatprep.subr.bf16.mxu1 %v1087_v25  ;;  %v1090_v28 = vld [vmem:[#allocation8 + $0x54] ss:$8 sps:$4 sm:$0xff]   ;;  %v1069_v30 = vld [vmem:[#allocation6 + $0xc4] ss:$8 sps:$4 sm:$0xff]   ;;  %v1092_v31 = vld [vmem:[#allocation8 + $0x50] ss:$8 sps:$4 sm:$0xff]  }
  0x33   :  { %327 = vmatprep.subr.bf16.mxu0 %v1045_v6  ;;  %v1093_v32 = vld [vmem:[#allocation8 + $0x44] ss:$8 sps:$4 sm:$0xff]   ;;  %v1071_v33 = vld [vmem:[#allocation6 + $0xc0] ss:$8 sps:$4 sm:$0xff]   ;;  %v1072_v34 = vld [vmem:[#allocation6 + $0xb4] ss:$8 sps:$4 sm:$0xff]  }
  0x34   :  { %v1095_v35 = vld [vmem:[#allocation8 + $0x40] ss:$8 sps:$4 sm:$0xff]   ;;  %v1096_v36 = vld [vmem:[#allocation8 + $0x34] ss:$8 sps:$4 sm:$0xff]   ;;  %v1074_v37 = vld [vmem:[#allocation6 + $0xb0] ss:$8 sps:$4 sm:$0xff]  }
  0x35   :  { %689 = vmatpush1.bf16.msra.mxu1 %v1089_v27  ;;  %v1075_v38 = vld [vmem:[#allocation6 + $0xa4] ss:$8 sps:$4 sm:$0xff]   ;;  %v1098_v39 = vld [vmem:[#allocation8 + $0x30] ss:$8 sps:$4 sm:$0xff]   ;;  %v1077_v41 = vld [vmem:[#allocation6 + $0xa0] ss:$8 sps:$4 sm:$0xff]  }
  0x36   :  { %328 = vmatpush1.bf16.msra.mxu0 %v1047_v7  ;;  %690 = vmatprep.subr.bf16.mxu1 %v1090_v28  ;;  %v1099_v40 = vld [vmem:[#allocation8 + $0x24] ss:$8 sps:$4 sm:$0xff]   ;;  %v1101_v42 = vld [vmem:[#allocation8 + $0x20] ss:$8 sps:$4 sm:$0xff]   ;;  %v1078_v43 = vld [vmem:[#allocation6 + $0x94] ss:$8 sps:$4 sm:$0xff]  }
  0x37   :  { %329 = vmatprep.subr.bf16.mxu0 %v1048_v8  ;;  %v1102_v44 = vld [vmem:[#allocation8 + $0x14] ss:$8 sps:$4 sm:$0xff]   ;;  %v1080_v45 = vld [vmem:[#allocation6 + $0x90] ss:$8 sps:$4 sm:$0xff]   ;;  %v1081_v47 = vld [vmem:[#allocation6 + $0x84] ss:$8 sps:$4 sm:$0xff]  }
  0x38   :  { %v1104_v46 = vld [vmem:[#allocation8 + $0x10] ss:$8 sps:$4 sm:$0xff]   ;;  %v1105_v48 = vld [vmem:[#allocation8 + $0x4] ss:$8 sps:$4 sm:$0xff]   ;;  %v1083_v49 = vld [vmem:[#allocation6 + $0x80] ss:$8 sps:$4 sm:$0xff]  }
  0x39   :  { %691 = vmatpush1.bf16.msra.mxu1 %v1092_v31  ;;  %v71_v51 = vld [vmem:[#allocation3 + $0x10] sm:$0xff]  ;;  %v1107_v52 = vld [vmem:[#allocation8] ss:$8 sps:$4 sm:$0xff]   ;;  %v76_v54 = vld [vmem:[#allocation3 + $0x38] sm:$0xff]  ;;  %s954_s23 = sshll.u32 %s1225_s22, 4  ;;  %s955_s23 = int_to_ptr.vmem [resolvable:$true] %s954_s23 }
  0x3a   :  { %330 = vmatpush1.bf16.msra.mxu0 %v1050_v9  ;;  %692 = vmatprep.subr.bf16.mxu1 %v1093_v32  ;;  %v74_v53 = vld [vmem:[#allocation3 + $0x28] sm:$0xff]  ;;  %v1108_v55 = vld [vmem:[#allocation8 + $0xf4] ss:$8 sps:$4 sm:$0xff]   ;;  %v101_v56 = vpack.c.bf16 %v71_v51, %v69_v50  ;;  %v1110_v58 = vld [vmem:[#allocation8 + $0xf0] ss:$8 sps:$4 sm:$0xff]   ;;  %s1192_s24 = scalar_lea.vmem %s955_s23, 16  ;;  %p1197_p2 = scmp.lt.s32.totalorder %s955_s23, %s955_s23 }
  0x3b   :  { %331 = vmatprep.subr.bf16.mxu0 %v1051_v10  ;;  %v104_v57 = vpack.c.bf16 %v76_v54, %v74_v53  ;;  %v1111_v59 = vld [vmem:[#allocation8 + $0xe4] ss:$8 sps:$4 sm:$0xff]   ;;  %v75_v61 = vld [vmem:[#allocation3 + $0x30] sm:$0xff]  ;;  %v1113_v62 = vld [vmem:[#allocation8 + $0xe0] ss:$8 sps:$4 sm:$0xff]   ;;  %p1193_p1 = scmp.ne.s32.totalorder %s955_s23, %s1192_s24  ;;  %s1196_s25 = scalar_lea.vmem %s955_s23, 32 }
  0x3c   :  { %v73_v60 = vld [vmem:[#allocation3 + $0x20] sm:$0xff]  ;;  %v78_v63 = vld [vmem:[#allocation3 + $0x48] sm:$0xff]  ;;  %v80_v0 = vld [vmem:[#allocation3 + $0x58] sm:$0xff]  ;;  %p1198_p3 = scmp.lt.s32.totalorder %s1196_s25, %s1192_s24 }
  0x3d   :  { %693 = vmatpush1.bf16.msra.mxu1 %v1095_v35  ;;  %v1114_v1 = vld [vmem:[#allocation8 + $0xd4] ss:$8 sps:$4 sm:$0xff]   ;;  %v103_v2 = vpack.c.bf16 %v75_v61, %v73_v60  ;;  %v106_v3 = vpack.c.bf16 %v80_v0, %v78_v63  ;;  %v1116_v4 = vld [vmem:[#allocation8 + $0xd0] ss:$8 sps:$4 sm:$0xff]   ;;  %v1117_v5 = vld [vmem:[#allocation8 + $0xc4] ss:$8 sps:$4 sm:$0xff]  }
  0x3e   :  { %332 = vmatpush1.bf16.msra.mxu0 %v1053_v11  ;;  %694 = vmatprep.subr.bf16.mxu1 %v1096_v36  ;;  %v77_v6 = vld [vmem:[#allocation3 + $0x40] sm:$0xff]  ;;  %v79_v7 = vld [vmem:[#allocation3 + $0x50] sm:$0xff]  ;;  %v82_v9 = vld [vmem:[#allocation3 + $0x68] sm:$0xff]  ;;  %p1199_p4 = por %p1198_p3, %p1197_p2 }
  0x3f   :  { %333 = vmatprep.subr.bf16.mxu0 %v1054_v12  ;;  %v1119_v8 = vld [vmem:[#allocation8 + $0xc0] ss:$8 sps:$4 sm:$0xff]   ;;  %v84_v10 = vld [vmem:[#allocation3 + $0x78] sm:$0xff]  ;;  %v105_v12 = vpack.c.bf16 %v79_v7, %v77_v6  ;;  %v87_v22 = vld [vmem:[#allocation3 + $0x90] sm:$0xff] }
  0x40   :  { %v1120_v11 = vld [vmem:[#allocation8 + $0xb4] ss:$8 sps:$4 sm:$0xff]   ;;  %v108_v13 = vpack.c.bf16 %v84_v10, %v82_v9  ;;  %v1122_v14 = vld [vmem:[#allocation8 + $0xb0] ss:$8 sps:$4 sm:$0xff]   ;;  %v81_v15 = vld [vmem:[#allocation3 + $0x60] sm:$0xff]  ;;  %p1200_p5 = pnand %p1199_p4, %p1193_p1 }
  0x41   :  { %695 = vmatpush1.bf16.msra.mxu1 %v1098_v39  ;;  %v90_v23 = vld [vmem:[#allocation3 + $0xa8] sm:$0xff]  ;;  %v89_v27 = vld [vmem:[#allocation3 + $0xa0] sm:$0xff]  ;;  %v91_v28 = vld [vmem:[#allocation3 + $0xb0] sm:$0xff] }
  0x42   :  { %334 = vmatpush1.bf16.msra.mxu0 %v1056_v16  ;;  %696 = vmatprep.subr.bf16.mxu1 %v1099_v40  ;;  %v83_v16 = vld [vmem:[#allocation3 + $0x70] sm:$0xff]  ;;  %v111_v31 = vpack.c.bf16 %v91_v28, %v89_v27  ;;  %v98_v35 = vld [vmem:[#allocation3 + $0xe8] sm:$0xff]  ;;  %v100_v36 = vld [vmem:[#allocation3 + $0xf8] sm:$0xff] }
  0x43   :  { %335 = vmatprep.subr.bf16.mxu0 %v1057_v17  ;;  %v86_v17 = vld [vmem:[#allocation3 + $0x88] sm:$0xff]  ;;  %v97_v39 = vld [vmem:[#allocation3 + $0xe0] sm:$0xff]  ;;  %v99_v40 = vld [vmem:[#allocation3 + $0xf0] sm:$0xff] }
  0x45   :  { %697 = vmatpush1.bf16.msra.mxu1 %v1101_v42  ;;  %v1123_v42 = vld [vmem:[#allocation8 + $0xa4] ss:$8 sps:$4 sm:$0xff]  }
  0x46   :  { %336 = vmatpush1.bf16.msra.mxu0 %v1059_v18  ;;  %698 = vmatprep.subr.bf16.mxu1 %v1102_v44  ;;  %v88_v18 = vld [vmem:[#allocation3 + $0x98] sm:$0xff] }
  0x47   :  { %337 = vmatprep.subr.bf16.mxu0 %v1060_v19  ;;  %v107_v19 = vpack.c.bf16 %v83_v16, %v81_v15  ;;  %v1126_v44 = vld [vmem:[#allocation8 + $0x94] ss:$8 sps:$4 sm:$0xff]  }
  0x49   :  { %699 = vmatpush1.bf16.msra.mxu1 %v1104_v46  ;;  %v1129_v46 = vld [vmem:[#allocation8 + $0x84] ss:$8 sps:$4 sm:$0xff]  }
  0x4a   :  { %338 = vmatpush2.bf16.msra.mxu0 %v1062_v20  ;;  %700 = vmatprep.subr.bf16.mxu1 %v1105_v48  ;;  %v110_v20 = vpack.c.bf16 %v88_v18, %v86_v17  ;;  %v151_v48 = vlaneseq }
  0x4b   :  { %339 = vmatprep.subr.bf16.mxu0 %v1063_v21  ;;  %v85_v21 = vld [vmem:[#allocation3 + $0x80] sm:$0xff] }
  0x4c   :  { %v109_v25 = vpack.c.bf16 %v87_v22, %v85_v21 }
  0x4d   :  { %701 = vmatpush1.bf16.msra.mxu1 %v1107_v52  ;;  %v149_v52 = vld [vmem:[%s1410_s2] sm:$0x3] }
  0x4e   :  { %340 = vmatpush2.bf16.msra.mxu0 %v1065_v24  ;;  %702 = vmatprep.subr.bf16.mxu1 %v1108_v55  ;;  %v92_v24 = vld [vmem:[#allocation3 + $0xb8] sm:$0xff] }
  0x4f   :  { %341 = vmatprep.subr.bf16.mxu0 %v1066_v26  ;;  %v112_v26 = vpack.c.bf16 %v92_v24, %v90_v23 }
  0x51   :  { %703 = vmatpush2.bf16.msra.mxu1 %v1110_v58 }
  0x52   :  { %342 = vmatpush2.bf16.msra.mxu0 %v1068_v29  ;;  %704 = vmatprep.subr.bf16.mxu1 %v1111_v59  ;;  %v94_v29 = vld [vmem:[#allocation3 + $0xc8] sm:$0xff] }
  0x53   :  { %343 = vmatprep.subr.bf16.mxu0 %v1069_v30  ;;  %v96_v30 = vld [vmem:[#allocation3 + $0xd8] sm:$0xff] }
  0x54   :  { %v114_v32 = vpack.c.bf16 %v96_v30, %v94_v29 }
  0x55   :  { %705 = vmatpush2.bf16.msra.mxu1 %v1113_v62 }
  0x56   :  { %344 = vmatpush2.bf16.msra.mxu0 %v1071_v33  ;;  %706 = vmatprep.subr.bf16.mxu1 %v1114_v1  ;;  %v93_v33 = vld [vmem:[#allocation3 + $0xc0] sm:$0xff] }
  0x57   :  { %345 = vmatprep.subr.bf16.mxu0 %v1072_v34  ;;  %v95_v34 = vld [vmem:[#allocation3 + $0xd0] sm:$0xff] }
  0x59   :  { %707 = vmatpush2.bf16.msra.mxu1 %v1116_v4 }
  0x5a   :  { %346 = vmatpush2.bf16.msra.mxu0 %v1074_v37  ;;  %708 = vmatprep.subr.bf16.mxu1 %v1117_v5  ;;  %v113_v37 = vpack.c.bf16 %v95_v34, %v93_v33 }
  0x5b   :  { %347 = vmatprep.subr.bf16.mxu0 %v1075_v38  ;;  %v116_v38 = vpack.c.bf16 %v100_v36, %v98_v35 }
  0x5d   :  { %709 = vmatpush2.bf16.msra.mxu1 %v1119_v8 }
  0x5e   :  { %348 = vmatpush2.bf16.msra.mxu0 %v1077_v41  ;;  %710 = vmatprep.subr.bf16.mxu1 %v1120_v11  ;;  %v115_v41 = vpack.c.bf16 %v99_v40, %v97_v39 }
  0x5f   :  { %349 = vmatprep.subr.bf16.mxu0 %v1078_v43  ;;  %v1125_v43 = vld [vmem:[#allocation8 + $0xa0] ss:$8 sps:$4 sm:$0xff]  }
  0x61   :  { %711 = vmatpush2.bf16.msra.mxu1 %v1122_v14 }
  0x62   :  { %350 = vmatpush2.bf16.msra.mxu0 %v1080_v45  ;;  %712 = vmatprep.subr.bf16.mxu1 %v1123_v42  ;;  %v1128_v45 = vld [vmem:[#allocation8 + $0x90] ss:$8 sps:$4 sm:$0xff]  }
  0x63   :  { %351 = vmatprep.subr.bf16.mxu0 %v1081_v47  ;;  %v1131_v47 = vld [vmem:[#allocation8 + $0x80] ss:$8 sps:$4 sm:$0xff]  }
  0x65   :  { %713 = vmatpush2.bf16.msra.mxu1 %v1125_v43 }
  0x66   :  { %352 = vmatpush2.bf16.msra.mxu0 %v1083_v49  ;;  %714 = vmatprep.subr.bf16.mxu1 %v1126_v44  ;;  %v152_v49 = vshrl.u32 %v151_v48, 7 }
  0x68   :  { %v1275_v50 = vsub.s32 1, %v152_v49  ;;  %v1277_v51 = vsub.s32 0, %v152_v49 }
  0x69   :  { %354 = vmatmul.mubr.bf16.vlgmr.msra.gmra.mxu0 %v101_v56  ;;  %715 = vmatpush2.bf16.msra.mxu1 %v1128_v45 }
  0x6a   :  { %363 = vmatprep.mubr.bf16.mxu0 %v104_v57  ;;  %716 = vmatprep.subr.bf16.mxu1 %v1129_v46  ;;  %v1283_v54 = vrot.slane %v149_v52, %v1275_v50  ;;  %v1286_v55 = vrot.slane %v149_v52, %v1277_v51 }
  0x6d   :  { %717 = vmatpush2.bf16.msra.mxu1 %v1131_v47 }
  0x71   :  { %364 = vmatmul.mubr.bf16.gmra.mxu0 %v103_v2 }
  0x72   :  { %373 = vmatprep.mubr.bf16.mxu0 %v106_v3 }
  0x79   :  { %374 = vmatmul.mubr.bf16.gmra.mxu0 %v105_v12 }
  0x7a   :  { %383 = vmatprep.mubr.bf16.mxu0 %v108_v13 }
  0x81   :  { %384 = vmatmul.mubr.bf16.gmra.mxu0 %v107_v19 }
  0x82   :  { %393 = vmatprep.mubr.bf16.mxu0 %v110_v20 }
  0x89   :  { %394 = vmatmul.mubr.bf16.gmra.mxu0 %v109_v25 }
  0x8a   :  { %403 = vmatprep.mubr.bf16.mxu0 %v112_v26 }
  0x91   :  { %404 = vmatmul.mubr.bf16.gmra.mxu0 %v111_v31 }
  0x92   :  { %413 = vmatprep.mubr.bf16.mxu0 %v114_v32 }
  0x99   :  { %414 = vmatmul.mubr.bf16.gmra.mxu0 %v113_v37 }
  0x9a   :  { %423 = vmatprep.mubr.bf16.mxu0 %v116_v38 }
  0xa1   :  { %424 = vmatmul.mubr.bf16.gmra.mxu0 %v115_v41 }
 0x129   :  { %v355_v53 = vpop.f32.mrf.mxu0 }
 0x12a   :  { %v356_v60 = vadd.f32 %v355_v53, %v1286_v55 }
 0x12b   :  { %v357_v56 = vpop.f32.mrf.mxu0 }
 0x12c   :  { %v358_v58 = vadd.f32 %v357_v56, %v1283_v54  ;;  %v434_v3 = vmax.f32 %v356_v60, 0.0 }
 0x12d   :  { %v359_v57 = vpop.f32.mrf.mxu0 }
 0x12e   :  { %v360_v59 = vadd.f32 %v359_v57, %v1286_v55  ;;  %v435_v1 = vmax.f32 %v358_v58, 0.0 }
 0x12f   :  { %v361_v61 = vpop.f32.mrf.mxu0 }
 0x130   :  { %v362_v62 = vadd.f32 %v361_v61, %v1283_v54  ;;  %v436_v63 = vmax.f32 %v360_v59, 0.0 }
 0x131   :  { %v365_v0 = vpop.f32.mrf.mxu0 }
 0x132   :  { %v437_v2 = vmax.f32 %v362_v62, 0.0  ;;  %v466_v6 = vpack.c.bf16 %v436_v63, %v434_v3  ;;  %v366_v10 = vadd.f32 %v365_v0, %v1286_v55 }
 0x133   :  { %v367_v4 = vpop.f32.mrf.mxu0 }
 0x134   :  { %v467_v5 = vpack.c.bf16 %v437_v2, %v435_v1  ;;  %v368_v8 = vadd.f32 %v367_v4, %v1283_v54  ;;  %v438_v17 = vmax.f32 %v366_v10, 0.0 }
 0x135   :  { %v369_v7 = vpop.f32.mrf.mxu0 }
 0x136   :  { %v370_v9 = vadd.f32 %v369_v7, %v1286_v55  ;;  %718 = vmatprep.mubr.bf16.mxu1 %v467_v5  ;;  %v439_v15 = vmax.f32 %v368_v8, 0.0 }
 0x137   :  { %v371_v11 = vpop.f32.mrf.mxu0  ;;  %719 = vmatmul.mubr.bf16.vlgmr.msra.gmra.mxu1 %v466_v6 }
 0x138   :  { %v372_v12 = vadd.f32 %v371_v11, %v1283_v54  ;;  %v440_v13 = vmax.f32 %v370_v9, 0.0 }
 0x139   :  { %v375_v14 = vpop.f32.mrf.mxu0 }
 0x13a   :  { %v441_v16 = vmax.f32 %v372_v12, 0.0  ;;  %v468_v20 = vpack.c.bf16 %v440_v13, %v438_v17  ;;  %v376_v24 = vadd.f32 %v375_v14, %v1286_v55 }
 0x13b   :  { %v377_v18 = vpop.f32.mrf.mxu0 }
 0x13c   :  { %v469_v19 = vpack.c.bf16 %v441_v16, %v439_v15  ;;  %v378_v22 = vadd.f32 %v377_v18, %v1283_v54  ;;  %v442_v31 = vmax.f32 %v376_v24, 0.0 }
 0x13d   :  { %v379_v21 = vpop.f32.mrf.mxu0 }
 0x13e   :  { %v380_v23 = vadd.f32 %v379_v21, %v1286_v55  ;;  %728 = vmatprep.mubr.bf16.mxu1 %v469_v19  ;;  %v443_v29 = vmax.f32 %v378_v22, 0.0 }
 0x13f   :  { %v381_v25 = vpop.f32.mrf.mxu0  ;;  %729 = vmatmul.mubr.bf16.gmra.mxu1 %v468_v20 }
 0x140   :  { %v382_v26 = vadd.f32 %v381_v25, %v1283_v54  ;;  %v444_v27 = vmax.f32 %v380_v23, 0.0 }
 0x141   :  { %v385_v28 = vpop.f32.mrf.mxu0 }
 0x142   :  { %v445_v30 = vmax.f32 %v382_v26, 0.0  ;;  %v470_v34 = vpack.c.bf16 %v444_v27, %v442_v31  ;;  %v386_v38 = vadd.f32 %v385_v28, %v1286_v55 }
 0x143   :  { %v387_v32 = vpop.f32.mrf.mxu0 }
 0x144   :  { %v471_v33 = vpack.c.bf16 %v445_v30, %v443_v29  ;;  %v388_v36 = vadd.f32 %v387_v32, %v1283_v54  ;;  %v446_v45 = vmax.f32 %v386_v38, 0.0 }
 0x145   :  { %v389_v35 = vpop.f32.mrf.mxu0 }
 0x146   :  { %v390_v37 = vadd.f32 %v389_v35, %v1286_v55  ;;  %738 = vmatprep.mubr.bf16.mxu1 %v471_v33  ;;  %v447_v43 = vmax.f32 %v388_v36, 0.0 }
 0x147   :  { %v391_v39 = vpop.f32.mrf.mxu0  ;;  %739 = vmatmul.mubr.bf16.gmra.mxu1 %v470_v34 }
 0x148   :  { %v392_v40 = vadd.f32 %v391_v39, %v1283_v54  ;;  %v448_v41 = vmax.f32 %v390_v37, 0.0 }
 0x149   :  { %v395_v42 = vpop.f32.mrf.mxu0 }
 0x14a   :  { %v449_v44 = vmax.f32 %v392_v40, 0.0  ;;  %v472_v48 = vpack.c.bf16 %v448_v41, %v446_v45  ;;  %v396_v56 = vadd.f32 %v395_v42, %v1286_v55 }
 0x14b   :  { %v397_v46 = vpop.f32.mrf.mxu0 }
 0x14c   :  { %v473_v47 = vpack.c.bf16 %v449_v44, %v447_v43  ;;  %v398_v52 = vadd.f32 %v397_v46, %v1283_v54  ;;  %v450_v63 = vmax.f32 %v396_v56, 0.0  ;;  %v514_v43 = vld [vmem:[%s1412_s4] sm:$0x3] }
 0x14d   :  { %v399_v49 = vpop.f32.mrf.mxu0  ;;  %v1324_v44 = vrot.slane %v514_v43, %v1277_v51 }
 0x14e   :  { %v400_v53 = vadd.f32 %v399_v49, %v1286_v55  ;;  %748 = vmatprep.mubr.bf16.mxu1 %v473_v47  ;;  %v451_v61 = vmax.f32 %v398_v52, 0.0 }
 0x14f   :  { %v401_v57 = vpop.f32.mrf.mxu0  ;;  %749 = vmatmul.mubr.bf16.gmra.mxu1 %v472_v48 }
 0x150   :  { %v402_v58 = vadd.f32 %v401_v57, %v1283_v54  ;;  %v452_v59 = vmax.f32 %v400_v53, 0.0 }
 0x151   :  { %v405_v60 = vpop.f32.mrf.mxu0 }
 0x152   :  { %v453_v62 = vmax.f32 %v402_v58, 0.0  ;;  %v474_v2 = vpack.c.bf16 %v452_v59, %v450_v63  ;;  %v406_v6 = vadd.f32 %v405_v60, %v1286_v55 }
 0x153   :  { %v407_v0 = vpop.f32.mrf.mxu0 }
 0x154   :  { %v475_v1 = vpack.c.bf16 %v453_v62, %v451_v61  ;;  %v408_v4 = vadd.f32 %v407_v0, %v1283_v54  ;;  %v454_v13 = vmax.f32 %v406_v6, 0.0 }
 0x155   :  { %v409_v3 = vpop.f32.mrf.mxu0 }
 0x156   :  { %v410_v5 = vadd.f32 %v409_v3, %v1286_v55  ;;  %758 = vmatprep.mubr.bf16.mxu1 %v475_v1  ;;  %v455_v11 = vmax.f32 %v408_v4, 0.0 }
 0x157   :  { %v411_v7 = vpop.f32.mrf.mxu0  ;;  %759 = vmatmul.mubr.bf16.gmra.mxu1 %v474_v2 }
 0x158   :  { %v412_v8 = vadd.f32 %v411_v7, %v1283_v54  ;;  %v456_v9 = vmax.f32 %v410_v5, 0.0 }
 0x159   :  { %v415_v10 = vpop.f32.mrf.mxu0 }
 0x15a   :  { %v457_v12 = vmax.f32 %v412_v8, 0.0  ;;  %v476_v16 = vpack.c.bf16 %v456_v9, %v454_v13  ;;  %v416_v20 = vadd.f32 %v415_v10, %v1286_v55 }
 0x15b   :  { %v417_v14 = vpop.f32.mrf.mxu0 }
 0x15c   :  { %v477_v15 = vpack.c.bf16 %v457_v12, %v455_v11  ;;  %v418_v18 = vadd.f32 %v417_v14, %v1283_v54  ;;  %v458_v27 = vmax.f32 %v416_v20, 0.0 }
 0x15d   :  { %v419_v17 = vpop.f32.mrf.mxu0 }
 0x15e   :  { %v420_v19 = vadd.f32 %v419_v17, %v1286_v55  ;;  %768 = vmatprep.mubr.bf16.mxu1 %v477_v15  ;;  %v459_v25 = vmax.f32 %v418_v18, 0.0 }
 0x15f   :  { %v421_v21 = vpop.f32.mrf.mxu0  ;;  %769 = vmatmul.mubr.bf16.gmra.mxu1 %v476_v16 }
 0x160   :  { %v422_v22 = vadd.f32 %v421_v21, %v1283_v54  ;;  %v460_v23 = vmax.f32 %v420_v19, 0.0 }
 0x161   :  { %v425_v24 = vpop.f32.mrf.mxu0 }
 0x162   :  { %v461_v26 = vmax.f32 %v422_v22, 0.0  ;;  %v478_v30 = vpack.c.bf16 %v460_v23, %v458_v27  ;;  %v426_v34 = vadd.f32 %v425_v24, %v1286_v55 }
 0x163   :  { %v427_v28 = vpop.f32.mrf.mxu0 }
 0x164   :  { %v479_v29 = vpack.c.bf16 %v461_v26, %v459_v25  ;;  %v428_v32 = vadd.f32 %v427_v28, %v1283_v54  ;;  %v462_v40 = vmax.f32 %v426_v34, 0.0 }
 0x165   :  { %v429_v31 = vpop.f32.mrf.mxu0 }
 0x166   :  { %v430_v33 = vadd.f32 %v429_v31, %v1286_v55  ;;  %778 = vmatprep.mubr.bf16.mxu1 %v479_v29  ;;  %v463_v38 = vmax.f32 %v428_v32, 0.0  ;;  %v1327_v55 = vrot.slane %v514_v43, %v1275_v50 }
 0x167   :  { %v431_v35 = vpop.f32.mrf.mxu0  ;;  %779 = vmatmul.mubr.bf16.gmra.mxu1 %v478_v30 }
 0x168   :  { %v432_v36 = vadd.f32 %v431_v35, %v1283_v54  ;;  %v464_v37 = vmax.f32 %v430_v33, 0.0  ;;  %v831_v54 = vld [vmem:[%s1413_s5] sm:$0x3] }
 0x169   :  { %v1335_v52 = vrot.slane %v831_v54, %v1277_v51  ;;  %v1338_v53 = vrot.slane %v831_v54, %v1275_v50 }
 0x16a   :  { %v465_v39 = vmax.f32 %v432_v36, 0.0  ;;  %v480_v42 = vpack.c.bf16 %v464_v37, %v462_v40 }
 0x16c   :  { %v481_v41 = vpack.c.bf16 %v465_v39, %v463_v38 }
 0x16e   :  { %788 = vmatprep.mubr.bf16.mxu1 %v481_v41 }
 0x16f   :  { %789 = vmatmul.mubr.bf16.gmra.mxu1 %v480_v42 }
 0x1f7   :  { %v720_v45 = vpop.f32.mrf.mxu1 }
 0x1f8   :  { %v721_v46 = vadd.f32 %v720_v45, %v1324_v44 }
 0x1f9   :  { %v722_v47 = vpop.f32.mrf.mxu1 }
 0x1fa   :  { %v799_v48 = vmax.f32 %v721_v46, 0.0  ;;  %v723_v49 = vadd.f32 %v722_v47, %v1327_v55 }
 0x1fb   :  { %v724_v56 = vpop.f32.mrf.mxu1 }
 0x1fc   :  { %v800_v57 = vmax.f32 %v723_v49, 0.0  ;;  %v725_v58 = vadd.f32 %v724_v56, %v1324_v44  ;;  %v843_v62 = vmul.f32 %v1335_v52, %v799_v48 }
 0x1fd   :  { %v726_v59 = vpop.f32.mrf.mxu1 }
 0x1fe   :  { %v801_v60 = vmax.f32 %v725_v58, 0.0  ;;  %v727_v61 = vadd.f32 %v726_v59, %v1327_v55  ;;  %v844_v63 = vmul.f32 %v1338_v53, %v800_v57 }
 0x1ff   :  { %v730_v0 = vpop.f32.mrf.mxu1 }
 0x200   :  { %v802_v1 = vmax.f32 %v727_v61, 0.0  ;;  %v731_v51 = vadd.f32 %v730_v0, %v1324_v44  ;;  %v875_v2 = vadd.f32 %v844_v63, %v843_v62  ;;  %v845_v50 = vmul.f32 %v1335_v52, %v801_v60 }
 0x201   :  { %v732_v3 = vpop.f32.mrf.mxu1 }
 0x202   :  { %v846_v4 = vmul.f32 %v1338_v53, %v802_v1  ;;  %v803_v5 = vmax.f32 %v731_v51, 0.0  ;;  %v733_v6 = vadd.f32 %v732_v3, %v1327_v55  ;;  %891 = vxpose.xlu0.b32.start [1/16] %v875_v2, 128 }
 0x203   :  { %v734_v7 = vpop.f32.mrf.mxu1 }
 0x204   :  { %v804_v8 = vmax.f32 %v733_v6, 0.0  ;;  %v735_v9 = vadd.f32 %v734_v7, %v1324_v44  ;;  %v876_v10 = vadd.f32 %v846_v4, %v845_v50  ;;  %v847_v12 = vmul.f32 %v1335_v52, %v803_v5 }
 0x205   :  { %v736_v11 = vpop.f32.mrf.mxu1 }
 0x206   :  { %v848_v13 = vmul.f32 %v1338_v53, %v804_v8  ;;  %v805_v14 = vmax.f32 %v735_v9, 0.0  ;;  %v737_v15 = vadd.f32 %v736_v11, %v1327_v55  ;;  %892 = vxpose.xlu0.b32.cont [2/16] %v876_v10, 128 }
 0x207   :  { %v740_v16 = vpop.f32.mrf.mxu1 }
 0x208   :  { %v806_v17 = vmax.f32 %v737_v15, 0.0  ;;  %v741_v18 = vadd.f32 %v740_v16, %v1324_v44  ;;  %v877_v19 = vadd.f32 %v848_v13, %v847_v12  ;;  %v849_v21 = vmul.f32 %v1335_v52, %v805_v14 }
 0x209   :  { %v742_v20 = vpop.f32.mrf.mxu1 }
 0x20a   :  { %v850_v22 = vmul.f32 %v1338_v53, %v806_v17  ;;  %v807_v23 = vmax.f32 %v741_v18, 0.0  ;;  %v743_v24 = vadd.f32 %v742_v20, %v1327_v55  ;;  %893 = vxpose.xlu0.b32.cont [3/16] %v877_v19, 128 }
 0x20b   :  { %v744_v25 = vpop.f32.mrf.mxu1 }
 0x20c   :  { %v808_v26 = vmax.f32 %v743_v24, 0.0  ;;  %v745_v27 = vadd.f32 %v744_v25, %v1324_v44  ;;  %v878_v28 = vadd.f32 %v850_v22, %v849_v21  ;;  %v851_v30 = vmul.f32 %v1335_v52, %v807_v23 }
 0x20d   :  { %v746_v29 = vpop.f32.mrf.mxu1 }
 0x20e   :  { %v852_v31 = vmul.f32 %v1338_v53, %v808_v26  ;;  %v809_v32 = vmax.f32 %v745_v27, 0.0  ;;  %v747_v33 = vadd.f32 %v746_v29, %v1327_v55  ;;  %894 = vxpose.xlu0.b32.cont [4/16] %v878_v28, 128 }
 0x20f   :  { %v750_v34 = vpop.f32.mrf.mxu1 }
 0x210   :  { %v810_v35 = vmax.f32 %v747_v33, 0.0  ;;  %v751_v36 = vadd.f32 %v750_v34, %v1324_v44  ;;  %v879_v37 = vadd.f32 %v852_v31, %v851_v30  ;;  %v853_v39 = vmul.f32 %v1335_v52, %v809_v32 }
 0x211   :  { %v752_v38 = vpop.f32.mrf.mxu1 }
 0x212   :  { %v854_v40 = vmul.f32 %v1338_v53, %v810_v35  ;;  %v811_v41 = vmax.f32 %v751_v36, 0.0  ;;  %v753_v42 = vadd.f32 %v752_v38, %v1327_v55  ;;  %895 = vxpose.xlu0.b32.cont [5/16] %v879_v37, 128 }
 0x213   :  { %v754_v43 = vpop.f32.mrf.mxu1 }
 0x214   :  { %v812_v45 = vmax.f32 %v753_v42, 0.0  ;;  %v755_v54 = vadd.f32 %v754_v43, %v1324_v44  ;;  %v880_v46 = vadd.f32 %v854_v40, %v853_v39  ;;  %v855_v48 = vmul.f32 %v1335_v52, %v811_v41 }
 0x215   :  { %v756_v47 = vpop.f32.mrf.mxu1 }
 0x216   :  { %v856_v49 = vmul.f32 %v1338_v53, %v812_v45  ;;  %v813_v56 = vmax.f32 %v755_v54, 0.0  ;;  %v757_v57 = vadd.f32 %v756_v47, %v1327_v55  ;;  %896 = vxpose.xlu0.b32.cont [6/16] %v880_v46, 128 }
 0x217   :  { %v760_v58 = vpop.f32.mrf.mxu1 }
 0x218   :  { %v814_v59 = vmax.f32 %v757_v57, 0.0  ;;  %v761_v60 = vadd.f32 %v760_v58, %v1324_v44  ;;  %v881_v61 = vadd.f32 %v856_v49, %v855_v48  ;;  %v857_v63 = vmul.f32 %v1335_v52, %v813_v56 }
 0x219   :  { %v762_v62 = vpop.f32.mrf.mxu1 }
 0x21a   :  { %v858_v0 = vmul.f32 %v1338_v53, %v814_v59  ;;  %v815_v1 = vmax.f32 %v761_v60, 0.0  ;;  %v763_v51 = vadd.f32 %v762_v62, %v1327_v55  ;;  %897 = vxpose.xlu0.b32.cont [7/16] %v881_v61, 128 }
 0x21b   :  { %v764_v2 = vpop.f32.mrf.mxu1 }
 0x21c   :  { %v816_v3 = vmax.f32 %v763_v51, 0.0  ;;  %v765_v50 = vadd.f32 %v764_v2, %v1324_v44  ;;  %v882_v4 = vadd.f32 %v858_v0, %v857_v63  ;;  %v859_v6 = vmul.f32 %v1335_v52, %v815_v1 }
 0x21d   :  { %v766_v5 = vpop.f32.mrf.mxu1 }
 0x21e   :  { %v860_v7 = vmul.f32 %v1338_v53, %v816_v3  ;;  %v817_v8 = vmax.f32 %v765_v50, 0.0  ;;  %v767_v9 = vadd.f32 %v766_v5, %v1327_v55  ;;  %898 = vxpose.xlu0.b32.cont [8/16] %v882_v4, 128 }
 0x21f   :  { %v770_v10 = vpop.f32.mrf.mxu1 }
 0x220   :  { %v818_v11 = vmax.f32 %v767_v9, 0.0  ;;  %v771_v12 = vadd.f32 %v770_v10, %v1324_v44  ;;  %v883_v13 = vadd.f32 %v860_v7, %v859_v6  ;;  %v861_v15 = vmul.f32 %v1335_v52, %v817_v8 }
 0x221   :  { %v772_v14 = vpop.f32.mrf.mxu1 }
 0x222   :  { %v862_v16 = vmul.f32 %v1338_v53, %v818_v11  ;;  %v819_v17 = vmax.f32 %v771_v12, 0.0  ;;  %v773_v18 = vadd.f32 %v772_v14, %v1327_v55  ;;  %899 = vxpose.xlu0.b32.cont [9/16] %v883_v13, 128 }
 0x223   :  { %v774_v19 = vpop.f32.mrf.mxu1 }
 0x224   :  { %v820_v20 = vmax.f32 %v773_v18, 0.0  ;;  %v775_v21 = vadd.f32 %v774_v19, %v1324_v44  ;;  %v884_v22 = vadd.f32 %v862_v16, %v861_v15  ;;  %v863_v24 = vmul.f32 %v1335_v52, %v819_v17 }
 0x225   :  { %v776_v23 = vpop.f32.mrf.mxu1 }
 0x226   :  { %v864_v25 = vmul.f32 %v1338_v53, %v820_v20  ;;  %v821_v26 = vmax.f32 %v775_v21, 0.0  ;;  %v777_v27 = vadd.f32 %v776_v23, %v1327_v55  ;;  %900 = vxpose.xlu0.b32.cont [10/16] %v884_v22, 128 }
 0x227   :  { %v780_v28 = vpop.f32.mrf.mxu1 }
 0x228   :  { %v822_v29 = vmax.f32 %v777_v27, 0.0  ;;  %v781_v30 = vadd.f32 %v780_v28, %v1324_v44  ;;  %v885_v31 = vadd.f32 %v864_v25, %v863_v24  ;;  %v865_v33 = vmul.f32 %v1335_v52, %v821_v26 }
 0x229   :  { %v782_v32 = vpop.f32.mrf.mxu1 }
 0x22a   :  { %v866_v34 = vmul.f32 %v1338_v53, %v822_v29  ;;  %v823_v35 = vmax.f32 %v781_v30, 0.0  ;;  %v783_v36 = vadd.f32 %v782_v32, %v1327_v55  ;;  %901 = vxpose.xlu0.b32.cont [11/16] %v885_v31, 128 }
 0x22b   :  { %v784_v37 = vpop.f32.mrf.mxu1 }
 0x22c   :  { %v824_v38 = vmax.f32 %v783_v36, 0.0  ;;  %v785_v39 = vadd.f32 %v784_v37, %v1324_v44  ;;  %v886_v40 = vadd.f32 %v866_v34, %v865_v33  ;;  %v867_v42 = vmul.f32 %v1335_v52, %v823_v35 }
 0x22d   :  { %v786_v41 = vpop.f32.mrf.mxu1 }
 0x22e   :  { %v868_v43 = vmul.f32 %v1338_v53, %v824_v38  ;;  %v825_v45 = vmax.f32 %v785_v39, 0.0  ;;  %v787_v54 = vadd.f32 %v786_v41, %v1327_v55  ;;  %902 = vxpose.xlu0.b32.cont [12/16] %v886_v40, 128  ;;  %v945_v41 = vstv %s1414_s6 }
 0x22f   :  { %v790_v46 = vpop.f32.mrf.mxu1 }
 0x230   :  { %v826_v47 = vmax.f32 %v787_v54, 0.0  ;;  %v791_v48 = vadd.f32 %v790_v46, %v1324_v44  ;;  %v887_v49 = vadd.f32 %v868_v43, %v867_v42  ;;  %v869_v57 = vmul.f32 %v1335_v52, %v825_v45 }
 0x231   :  { %v792_v56 = vpop.f32.mrf.mxu1 }
 0x232   :  { %v870_v58 = vmul.f32 %v1338_v53, %v826_v47  ;;  %v827_v59 = vmax.f32 %v791_v48, 0.0  ;;  %v793_v60 = vadd.f32 %v792_v56, %v1327_v55  ;;  %903 = vxpose.xlu0.b32.cont [13/16] %v887_v49, 128 }
 0x233   :  { %v794_v61 = vpop.f32.mrf.mxu1 }
 0x234   :  { %v828_v62 = vmax.f32 %v793_v60, 0.0  ;;  %v795_v63 = vadd.f32 %v794_v61, %v1324_v44  ;;  %v888_v0 = vadd.f32 %v870_v58, %v869_v57  ;;  %v871_v51 = vmul.f32 %v1335_v52, %v827_v59 }
 0x235   :  { %v796_v1 = vpop.f32.mrf.mxu1 }
 0x236   :  { %v872_v2 = vmul.f32 %v1338_v53, %v828_v62  ;;  %v829_v3 = vmax.f32 %v795_v63, 0.0  ;;  %v797_v50 = vadd.f32 %v796_v1, %v1327_v55  ;;  %904 = vxpose.xlu0.b32.cont [14/16] %v888_v0, 128 }
 0x238   :  { %v830_v4 = vmax.f32 %v797_v50, 0.0  ;;  %v889_v5 = vadd.f32 %v872_v2, %v871_v51  ;;  %v873_v6 = vmul.f32 %v1335_v52, %v829_v3 }
 0x23a   :  { %v874_v7 = vmul.f32 %v1338_v53, %v830_v4  ;;  %905 = vxpose.xlu0.b32.cont [15/16] %v889_v5, 128 }
 0x23c   :  { %v890_v8 = vadd.f32 %v874_v7, %v873_v6 }
 0x23e   :  { %906 = vxpose.xlu0.b32.end [16/16] %v890_v8, 128 }
 0x27e   :  { %v907_v44 = vpop.trf.xlu0 }
 0x282   :  { %v908_v9 = vpop.trf.xlu0 }
 0x283   :  { %v923_v55 = vadd.f32 %v908_v9, %v907_v44 }
 0x286   :  { %v909_v10 = vpop.trf.xlu0 }
 0x287   :  { %v924_v17 = vadd.f32 %v923_v55, %v909_v10 }
 0x28a   :  { %v910_v11 = vpop.trf.xlu0 }
 0x28b   :  { %v925_v19 = vadd.f32 %v924_v17, %v910_v11 }
 0x28e   :  { %v911_v12 = vpop.trf.xlu0 }
 0x28f   :  { %v926_v20 = vadd.f32 %v925_v19, %v911_v12 }
 0x292   :  { %v912_v13 = vpop.trf.xlu0 }
 0x293   :  { %v927_v21 = vadd.f32 %v926_v20, %v912_v13 }
 0x296   :  { %v913_v14 = vpop.trf.xlu0 }
 0x297   :  { %v928_v53 = vadd.f32 %v927_v21, %v913_v14 }
 0x29a   :  { %v914_v15 = vpop.trf.xlu0 }
 0x29b   :  { %v929_v23 = vadd.f32 %v928_v53, %v914_v15 }
 0x29e   :  { %v915_v16 = vpop.trf.xlu0 }
 0x29f   :  { %v930_v24 = vadd.f32 %v929_v23, %v915_v16 }
 0x2a2   :  { %v916_v18 = vpop.trf.xlu0 }
 0x2a3   :  { %v931_v26 = vadd.f32 %v930_v24, %v916_v18 }
 0x2a6   :  { %v917_v52 = vpop.trf.xlu0 }
 0x2a7   :  { %v932_v27 = vadd.f32 %v931_v26, %v917_v52 }
 0x2aa   :  { %v918_v22 = vpop.trf.xlu0 }
 0x2ab   :  { %v933_v29 = vadd.f32 %v932_v27, %v918_v22 }
 0x2ae   :  { %v919_v25 = vpop.trf.xlu0 }
 0x2af   :  { %v934_v30 = vadd.f32 %v933_v29, %v919_v25 }
 0x2b2   :  { %v920_v28 = vpop.trf.xlu0 }
 0x2b3   :  { %v935_v32 = vadd.f32 %v934_v30, %v920_v28 }
 0x2b6   :  { %v921_v31 = vpop.trf.xlu0 }
 0x2b7   :  { %v936_v33 = vadd.f32 %v935_v32, %v921_v31 }
 0x2ba   :  { %v922_v34 = vpop.trf.xlu0 }
 0x2bb   :  { %v937_v35 = vadd.f32 %v936_v33, %v922_v34 }
 0x2bd   :  { %v938_v36 = vrot.slane %v937_v35, 4 }
 0x2bf   :  { %v939_v37 = vadd.f32 %v938_v36, %v937_v35 }
 0x2c1   :  { %v940_v38 = vrot.slane %v939_v37, 2 }
 0x2c3   :  { %v941_v39 = vadd.f32 %v940_v38, %v939_v37 }
 0x2c5   :  { %v942_v40 = vrot.slane %v941_v39, 1 }
 0x2c7   :  { %v943_v42 = vadd.f32 %v942_v40, %v941_v39 }
 0x2c9   :  { %v946_v43 = vadd.f32 %v945_v41, %v943_v42 }
 0x2cb   :  { %947 = vst [vmem:[#allocation9] sm:$0x1] %v946_v43 }
 0x2cc   :  { %1203 = shalt.err (!%p1200_p5)
}
 0x2cd   :  { %957 = dma.vmem_to_hbm [thread:$0]  %s955_s23, 16, %s1415_s7, [#allocation5]  }
 0x2ce   :  { %1216 = dma.done.wait [#allocation5], 16  }
 0x2cf   :  { %1217 = vsyncadd [#allocation5], 4294967280 }
 0x2d0   :  { %961 = vsyncpa [#allocation4], 1 }
 0x2d1   :  { %962 = vsyncpa [#allocation7], 1 }
 0x2d2   :  { %963 = vsyncpa [#allocation5], 1 }

</bundles_post_ra>
